<compile_context>
chip_gen: v7x
topology: tpu7x:2x2x1
jax: 0.10.0
libtpu: 0.0.40
codegen_flags: <defaults>
</compile_context>

<pallas_src>
import functools

import jax
import jax.numpy as jnp
from jax.experimental import pallas as pl
from jax.experimental.pallas import tpu as pltpu

_LANE = 128


def _round_up(v, m):
    return ((v + m - 1) // m) * m


def _vmem_budget_bytes():
    """Conservative per-TensorCore VMEM capacity.

    get_tpu_info may report per-chip capacity on dual-TC parts, so clamp to
    64 MiB (smallest physical per-TC VMEM across v5e/v6e/v7x).  512+-row batch
    tiles already reach ~85% of the HBM roofline, so this costs nothing.
    """
    cap = 64 << 20
    try:
        reported = int(pltpu.get_tpu_info().vmem_capacity_bytes)
        if reported >= (16 << 20):
            cap = min(reported, 64 << 20)
    except Exception:
        pass
    return cap


def _sublane(itemsize):
    # f32 -> 8 rows, bf16 -> 16, int8/fp8 -> 32 (sublane packing).
    return 8 * max(1, 4 // int(itemsize))


def _balance_block_b(B, max_rows, sublane):
    """Batch tile: sublane-aligned, even tile count when possible so the
    'parallel' batch axis load-balances across v7x's two TensorCores."""
    if B <= sublane:
        return B
    max_rows = max(sublane, (max_rows // sublane) * sublane)
    n_tiles = pl.cdiv(B, max_rows)
    if n_tiles % 2:
        n_tiles += 1
    block_b = _round_up(pl.cdiv(B, n_tiles), sublane)
    return min(block_b, max_rows)


def _full_d_rows(budget, d_pad, itemsize):
    # Per-row working set: double-buffered x + f32 upcast/product temporaries
    # + lane-padded accumulator/output buffers; plus the resident weight row.
    per_row = 2 * d_pad * itemsize + 2 * d_pad * 4 + 6 * _LANE * 4
    w_fixed = 2 * 8 * d_pad * 4
    return max(0, budget - w_fixed) // per_row


def _choose_tiling(B, D, budget, itemsize, sublane):
    """Return (block_b, block_k); block_k is None when D is not tiled."""
    d_pad = _round_up(D, _LANE)
    rows = _full_d_rows(budget, d_pad, itemsize)

    if rows >= B:
        return _balance_block_b(B, min(max(rows, 1), 2048), sublane), None
    rows_aligned = (rows // sublane) * sublane
    if rows_aligned >= 128:
        # Prefer shrinking block_b over K-tiling: the single-pass streaming
        # kernel stays near roofline down to ~128-512 row tiles.
        return _balance_block_b(B, min(rows_aligned, 2048), sublane), None

    # Very large D: tile the feature dim, accumulate into an f32 VMEM scratch.
    block_b = _balance_block_b(B, 512, sublane)
    per_col = block_b * (2 * itemsize + 2 * 4) + 2 * 8 * 4
    cols = max(0, budget - 6 * block_b * _LANE * 4) // per_col
    block_k = max(_LANE, (cols // _LANE) * _LANE)
    block_k = min(block_k, d_pad)
    return block_b, block_k


def _probe_kernel(x_ref, w_ref, b_ref, o_ref):
    # x: (TB, D), w: (1, D) lane-dense, b: (1, 1), o: (TB, 1).
    x = x_ref[...].astype(jnp.float32)
    w = w_ref[...].astype(jnp.float32)
    logits = jnp.sum(x * w, axis=-1, keepdims=True) + b_ref[...].astype(jnp.float32)
    o_ref[...] = jax.nn.sigmoid(logits).astype(o_ref.dtype)


def _probe_kernel_ktiled(x_ref, w_ref, b_ref, o_ref, acc_ref, *, d, block_k):
    # x: (TB, TK), w: (1, TK), acc: (TB, 1) f32, resident across the K axis.
    k = pl.program_id(1)

    @pl.when(k == 0)
    def _():
        acc_ref[...] = jnp.zeros_like(acc_ref)

    prod = x_ref[...].astype(jnp.float32) * w_ref[...].astype(jnp.float32)
    if d % block_k != 0:
        # Tail K tile: lanes past D hold unspecified data (x is never padded in
        # HBM), so mask them explicitly before the reduction.
        lane = jax.lax.broadcasted_iota(jnp.int32, prod.shape, 1)
        prod = jnp.where(k * block_k + lane < d, prod, 0.0)
    acc_ref[...] += jnp.sum(prod, axis=-1, keepdims=True)

    @pl.when(k == pl.num_programs(1) - 1)
    def _():
        logits = acc_ref[...] + b_ref[...].astype(jnp.float32)
        o_ref[...] = jax.nn.sigmoid(logits).astype(o_ref.dtype)


def classification_probe(x, weight, bias, *, block_b=None, block_k=None):
    """sigmoid(x @ W^T + b) -- Pallas TPU implementation of ClassificationProbe.

    x:      (..., D) activations (f32 or bf16; accumulation is always f32).
    weight: nn.Linear weight: (1, D) [PyTorch layout], (D,), or (D, 1).
    bias:   nn.Linear bias: (1,), (), or (1, 1).
    Returns (..., 1) in x.dtype.
    """
    x = jnp.asarray(x)
    lead = x.shape[:-1]
    D = x.shape[-1]
    x2d = x.reshape(-1, D)
    B = x2d.shape[0]

    weight = jnp.asarray(weight).reshape(1, D)   # lane-dense weight row
    bias = jnp.asarray(bias).reshape(1, 1)

    itemsize = jnp.dtype(x.dtype).itemsize
    sublane = _sublane(itemsize)
    cap = _vmem_budget_bytes()
    budget = cap // 2                 # working-set budget for one pipelined tile
    vmem_limit = (3 * cap) // 4       # <= 48 MiB: safe on every generation

    auto_b, auto_k = _choose_tiling(B, D, budget, itemsize, sublane)

    if block_b is None:
        block_b = auto_b
    else:
        block_b = max(1, int(block_b))
        if block_b % sublane:
            block_b = _round_up(block_b, sublane)
        if block_b >= B:
            block_b = B
    if block_k is None:
        block_k = auto_k
    else:
        block_k = int(block_k)
        block_k = None if block_k >= D else max(_LANE, _round_up(block_k, _LANE))

    if block_k is None:
        # --- single-pass streaming kernel: full feature dim per x tile ---
        grid = (pl.cdiv(B, block_b),)
        out = pl.pallas_call(
            _probe_kernel,
            out_shape=jax.ShapeDtypeStruct((B, 1), x.dtype),
            grid_spec=pltpu.PrefetchScalarGridSpec(
                num_scalar_prefetch=0,
                grid=grid,
                in_specs=[
                    pl.BlockSpec((block_b, D), lambda i: (i, 0)),   # x tile
                    pl.BlockSpec((1, D), lambda i: (0, 0)),         # weight row, resident
                    pl.BlockSpec((1, 1), lambda i: (0, 0)),         # bias, resident
                ],
                out_specs=pl.BlockSpec((block_b, 1), lambda i: (i, 0)),
            ),
            compiler_params=pltpu.CompilerParams(
                dimension_semantics=("parallel",),
                vmem_limit_bytes=int(vmem_limit),
            ),
        )(x2d, weight, bias)
    else:
        # --- K-tiled path for very large D: f32 scratch accumulator ---
        grid = (pl.cdiv(B, block_b), pl.cdiv(D, block_k))
        kernel = functools.partial(_probe_kernel_ktiled, d=D, block_k=block_k)
        out = pl.pallas_call(
            kernel,
            out_shape=jax.ShapeDtypeStruct((B, 1), x.dtype),
            grid_spec=pltpu.PrefetchScalarGridSpec(
                num_scalar_prefetch=0,
                grid=grid,
                in_specs=[
                    pl.BlockSpec((block_b, block_k), lambda i, k: (i, k)),  # x tile
                    pl.BlockSpec((1, block_k), lambda i, k: (0, k)),        # weight slice
                    pl.BlockSpec((1, 1), lambda i, k: (0, 0)),              # bias, resident
                ],
                out_specs=pl.BlockSpec((block_b, 1), lambda i, k: (i, 0)),
                scratch_shapes=[pltpu.VMEM((block_b, 1), jnp.float32)],
            ),
            compiler_params=pltpu.CompilerParams(
                dimension_semantics=("parallel", "arbitrary"),
                vmem_limit_bytes=int(vmem_limit),
            ),
        )(x2d, weight, bias)

    return out.reshape(*lead, 1)


if __name__ == "__main__":
    key = jax.random.PRNGKey(0)
    k_x, k_w, k_b, k_x2, k_w2, k_x3 = jax.random.split(key, 6)

    # ---- small shapes implied by the module: batch=8, in_dim=32 ----
    batch, in_dim = 8, 32
    bound = 1.0 / float(in_dim) ** 0.5
    weight = jax.random.uniform(k_w, (1, in_dim), jnp.float32, -bound, bound)  # PyTorch (out=1, in)
    bias = jax.random.uniform(k_b, (1,), jnp.float32, -bound, bound)
    x = jax.random.normal(k_x, (batch, in_dim), jnp.float32)

    out = jax.block_until_ready(classification_probe(x, weight, bias))
    ref = jax.nn.sigmoid(jnp.sum(x * weight, axis=-1, keepdims=True) + bias)
    assert out.shape == (batch, 1)
    assert jnp.allclose(out, ref, atol=2e-5, rtol=1e-5)

    # ---- K-tiled path with a ragged feature tail (exercises the lane mask) ----
    batch2, in_dim2 = 48, 200
    bound2 = 1.0 / float(in_dim2) ** 0.5
    weight2 = jax.random.uniform(k_w2, (1, in_dim2), jnp.float32, -bound2, bound2)
    x2 = jax.random.normal(k_x2, (batch2, in_dim2), jnp.float32)
    out2 = jax.block_until_ready(
        classification_probe(x2, weight2, bias, block_b=16, block_k=128))
    ref2 = jax.nn.sigmoid(jnp.sum(x2 * weight2, axis=-1, keepdims=True) + bias)
    assert out2.shape == (batch2, 1)
    assert jnp.allclose(out2, ref2, atol=1e-4, rtol=1e-5)

    # ---- bf16 activations (HBM fast path), f32 accumulation in-kernel ----
    x3 = jax.random.normal(k_x3, (24, in_dim), jnp.float32).astype(jnp.bfloat16)
    out3 = jax.block_until_ready(classification_probe(x3, weight, bias))
    ref3 = jax.nn.sigmoid(
        jnp.sum(x3.astype(jnp.float32) * weight, axis=-1, keepdims=True) + bias)
    assert out3.shape == (24, 1)
    assert jnp.allclose(out3.astype(jnp.float32), ref3, atol=2e-2, rtol=2e-2)

    print("KERNEL_OK")
</pallas_src>

<mosaic_0001>
module attributes {stable_mosaic.version = 11 : i64} {
  func.func @_probe_kernel(%arg0: i32, %arg1: memref<8x32xf32, #tpu.memory_space<vmem>>, %arg2: memref<1x32xf32, #tpu.memory_space<vmem>>, %arg3: memref<1x1xf32, #tpu.memory_space<vmem>>, %arg4: memref<8x1xf32, #tpu.memory_space<vmem>>) attributes {dimension_semantics = [#tpu.dimension_semantics<parallel>], iteration_bounds = array<i64: 1>, scalar_prefetch = 0 : i64, scratch_operands = 0 : i64, tpu.core_type = #tpu.core_type<tc>, window_params = [{transform_indices = @transform_0, window_bounds = array<i64: 8, 32>}, {pipeline_mode = #tpu.pipeline_mode<synchronous>, transform_indices = @transform_1, window_bounds = array<i64: 1, 32>}, {pipeline_mode = #tpu.pipeline_mode<synchronous>, transform_indices = @transform_2, window_bounds = array<i64: 1, 1>}, {transform_indices = @transform_3, window_bounds = array<i64: 8, 1>}]} {
    %c0 = arith.constant 0 : index
    %c0_0 = arith.constant 0 : index
    %0 = vector.load %arg1[%c0, %c0_0] : memref<8x32xf32, #tpu.memory_space<vmem>>, vector<8x32xf32>
    %c0_1 = arith.constant 0 : index
    %c0_2 = arith.constant 0 : index
    %1 = vector.load %arg2[%c0_1, %c0_2] : memref<1x32xf32, #tpu.memory_space<vmem>>, vector<1x32xf32>
    %2 = vector.broadcast %1 : vector<1x32xf32> to vector<8x32xf32>
    %3 = arith.mulf %0, %2 : vector<8x32xf32>
    %cst = arith.constant dense<0.000000e+00> : vector<8xf32>
    %4 = vector.multi_reduction <add>, %3, %cst [1] : vector<8x32xf32> to vector<8xf32>
    %5 = vector.shape_cast %4 : vector<8xf32> to vector<8x1xf32>
    %c0_3 = arith.constant 0 : index
    %c0_4 = arith.constant 0 : index
    %6 = vector.load %arg3[%c0_3, %c0_4] : memref<1x1xf32, #tpu.memory_space<vmem>>, vector<1x1xf32>
    %7 = vector.broadcast %6 : vector<1x1xf32> to vector<8x1xf32>
    %8 = arith.addf %5, %7 : vector<8x1xf32>
    %9 = arith.negf %8 : vector<8x1xf32>
    %10 = math.exp %9 : vector<8x1xf32>
    %cst_5 = arith.constant 1.000000e+00 : f32
    %11 = vector.broadcast %cst_5 : f32 to vector<8x1xf32>
    %12 = arith.addf %11, %10 : vector<8x1xf32>
    %13 = arith.divf %11, %12 : vector<8x1xf32>
    %c0_6 = arith.constant 0 : index
    %c0_7 = arith.constant 0 : index
    %14 = vector.load %arg4[%c0_6, %c0_7] : memref<8x1xf32, #tpu.memory_space<vmem>>, vector<8x1xf32>
    tpu.vector_store %arg4[%c0_6, %c0_7], %13 {strides = array<i32>} : memref<8x1xf32, #tpu.memory_space<vmem>>, vector<8x1xf32>,
    return
  }
  func.func @transform_0(%arg0: i32) -> (i32, i32) {
    %c0_i32 = arith.constant 0 : i32
    %c0_i32_0 = arith.constant 0 : i32
    return %arg0, %c0_i32 : i32, i32
  }
  func.func @transform_1(%arg0: i32) -> (i32, i32) {
    %c0_i32 = arith.constant 0 : i32
    %c0_i32_0 = arith.constant 0 : i32
    %c0_i32_1 = arith.constant 0 : i32
    return %c0_i32, %c0_i32_0 : i32, i32
  }
  func.func @transform_2(%arg0: i32) -> (i32, i32) {
    %c0_i32 = arith.constant 0 : i32
    %c0_i32_0 = arith.constant 0 : i32
    %c0_i32_1 = arith.constant 0 : i32
    return %c0_i32, %c0_i32_0 : i32, i32
  }
  func.func @transform_3(%arg0: i32) -> (i32, i32) {
    %c0_i32 = arith.constant 0 : i32
    %c0_i32_0 = arith.constant 0 : i32
    return %arg0, %c0_i32 : i32, i32
  }
}

</mosaic_0001>

<bundles_post_ra>
// kernel: tpu_custom_call.1
= control target key start
LH: loop header
LB: loop body
LE: loop exit
PB: predicated region body
PF: predicated region fallthrough
CT: control target
= control target key end

     0   :  { %s136_s0 = inlined_call_operand.hbm [shape: f32[8,32], index: 0, kind: input, shape index: {}]   ;;  %s137_s1 = inlined_call_operand.vmem [shape: f32[1,32], index: 1, kind: input, shape index: {}]   ;;  %s138_s2 = inlined_call_operand.<no memory space> [shape: f32[1,1], index: 2, kind: input, shape index: {}]   ;;  %s139_s3 = inlined_call_operand.vmem [shape: f32[8,1], index: 3, kind: output, shape index: {}]  }
   0x1   :  { %v8_v0 = vstv %s138_s2 }
   0x2   :  { %9 = vst [vmem:[#allocation2] sm:$0x1] %v8_v0 }
   0x3   :  { %10 = vsyncpa [#allocation4], 0  ;;  %s94_s14 = smov [#allocation3]   ;;  %s70_s18 = scalar_lea.hbm %s136_s0, 128 }
   0x4   :  { %s17_s15 = sshll.u32 %s94_s14, 4  ;;  %p71_p0 = scmp.ne.s32.totalorder %s136_s0, %s70_s18  ;;  %s18_s15 = int_to_ptr.vmem [resolvable:$true] %s17_s15 }
   0x5   :  { %p74_p1 = scmp.lt.u32.totalorder %s70_s18, %s136_s0 }
   0x7   :  { %p76_p2 = pnand %p74_p1, %p71_p0 }
   0x9   :  { %79 = shalt.err (!%p76_p2)
}
   0xa   :  { %s80_s2 = scalar_lea.vmem %s18_s15, 128  ;;  %p85_p4 = scmp.lt.s32.totalorder %s18_s15, %s18_s15 }
   0xb   :  { %p81_p3 = scmp.ne.s32.totalorder %s18_s15, %s80_s2  ;;  %p86_p5 = scmp.lt.s32.totalorder %s80_s2, %s80_s2 }
   0xd   :  { %p87_p6 = por %p86_p5, %p85_p4 }
   0xf   :  { %p88_p7 = pnand %p87_p6, %p81_p3 }
  0x11   :  { %91 = shalt.err (!%p88_p7)
}
  0x12   :  { %20 = dma.hbm_to_vmem [thread:$0]  %s136_s0, 128, %s18_s15, [#allocation4]  }
  0x13   :  { %92 = dma.done.wait [#allocation4], 128  }
  0x14   :  { %93 = vsyncadd [#allocation4], 4294967168  ;;  %v28_v1 = vld [vmem:[#allocation3] sm:$0xff]  ;;  %v62_v2 = vld [vmem:[%s137_s1] ss:$0 sm:$0xff]  ;;  %vm37_vm0 = vcmask 261120  }
  0x15   :  { %v36_v3 = vmul.f32 %v62_v2, %v28_v1  ;;  %v63_v5 = vld [vmem:[#allocation2] ss:$0 sm:$0xff]  ;;  %vm55_vm1 = vcmask 7168  }
  0x17   :  { %v38_v4 = vsel %vm37_vm0, %v36_v3, 0.0 }
  0x18   :  { %39 = vadd.xlane.f32.xlu0 %v38_v4 }
  0xa5   :  { %v40_v6 = vpop.xlane.xlu0 %39 }
  0xa6   :  { %v48_v7 = vadd.f32 %v63_v5, %v40_v6 }
  0xa8   :  { %v64_v8 = vmul.f32 -1.442695, %v48_v7 }
  0xaa   :  { %66 = vpow2.f32 %v64_v8 }
  0xb4   :  { %v67_v9 = vpop.eup %66 }
  0xb5   :  { %v52_v10 = vadd.f32 1.0, %v67_v9 }
  0xb7   :  { %68 = vrcp.f32 %v52_v10 }
  0xc1   :  { %v69_v11 = vpop.eup %68 }
  0xc2   :  { %56 = vst.msk [vmem:[%s139_s3] sm:$0xff] %vm55_vm1, %v69_v11 }
  0xc3   :  { %61 = vsyncpa [#allocation4], 1 }

</bundles_post_ra>
